<compile_context>
chip_gen: v6e
topology: v6e:2x2x1
jax: 0.10.0
libtpu: 0.0.40
codegen_flags: <defaults>
</compile_context>

<pallas_src>
import functools

import jax
import jax.numpy as jnp
from jax.experimental import pallas as pl
from jax.experimental.pallas import tpu as pltpu

_LANE = 128      # feature (output) dims padded to a multiple of the lane width
_ROW_TILE = 16   # batch tile granularity (bf16 sublane tile)


def _round_up(x, m):
    return -(-x // m) * m


def _mlp_kernel(x_ref, *refs, num_layers):
    """Fused MLP forward on VMEM-resident tiles.

    x_ref : (tm, K0)        f32 activations (K0 = true input size, unpadded)
    refs  : (wt_0, b_0, ..., wt_{L-1}, b_{L-1}, o_ref)
            wt_i : (K_i, N_i)  bf16, pre-transposed, output dim zero-padded
            b_i  : (1,  N_i)   f32, zero-padded
            o_ref: (tm, N_L)   f32 padded output tile
    Zero padding is self-consistent: padded weight rows/cols and bias lanes
    are 0, relu(0)=0, so padded lanes stay exactly 0 through every layer and
    the valid slice matches the reference.
    """
    o_ref = refs[-1]
    h = x_ref[...]                                    # f32, lives in vregs
    for i in range(num_layers):                       # static, unrolled
        wt = refs[2 * i][...]                         # bf16 (K_i, N_i)
        b = refs[2 * i + 1][...]                      # f32  (1,  N_i)
        # bf16 MXU inputs, f32 accumulation; bias add / ReLU stay f32.
        h = jnp.dot(h.astype(jnp.bfloat16), wt,
                    preferred_element_type=jnp.float32) + b
        if i < num_layers - 1:
            h = jnp.maximum(h, 0.0)                   # ReLU on hidden layers
    o_ref[...] = h.astype(o_ref.dtype)


def pack_params(params):
    """One-time parameter prep (hoisted out of the per-forward path).

    params: list of (weight (out,in), bias (out,)) in PyTorch nn.Linear layout.
    Returns pre-transposed bf16 weights (K, N_pad) with lane-padded output
    dims (first layer's K is kept at the true input size), f32 biases (1,
    N_pad), plus true/padded dims.
    """
    dims = [params[0][0].shape[1]] + [w.shape[0] for (w, _) in params]
    # Contraction dims: true input size for layer 0, padded outputs afterwards.
    k_dims = [dims[0]] + [_round_up(d, _LANE) for d in dims[1:-1]]
    n_dims = [_round_up(d, _LANE) for d in dims[1:]]
    wts, bs = [], []
    for i, (w, b) in enumerate(params):
        K, N = dims[i], dims[i + 1]
        Kp, Np = k_dims[i], n_dims[i]
        wt = jnp.zeros((Kp, Np), jnp.bfloat16).at[:K, :N].set(
            jnp.asarray(w, jnp.float32).T.astype(jnp.bfloat16))
        bp = jnp.zeros((1, Np), jnp.float32).at[0, :N].set(
            jnp.asarray(b, jnp.float32))
        wts.append(wt)
        bs.append(bp)
    return {"wts": wts, "bs": bs,
            "in_dim": dims[0], "out_dim": dims[-1], "out_pad": n_dims[-1]}


def _resident_spec(shape):
    """Spec for an operand whose block is constant along the batch grid axis:
    fetched once and VMEM-resident.  Single buffering (nothing to pipeline)
    halves its footprint; silently fall back if pipeline_mode is unavailable."""
    try:
        return pl.BlockSpec(shape, lambda i: (0, 0),
                            pipeline_mode=pl.Buffered(1))
    except Exception:                                  # older Pallas versions
        return pl.BlockSpec(shape, lambda i: (0, 0))


def mlp_forward(x, packed, *, tm=None):
    """Fused-MLP forward.  x: (batch, input_size) f32.  packed: pack_params()."""
    M, K = x.shape
    assert K == packed["in_dim"]
    num_layers = len(packed["wts"])
    Np_out = packed["out_pad"]

    # Row tile: multiple of 16 (bf16 sublane tile). Batch is only padded if it
    # is not already a multiple of the tile — no per-call pad in that case.
    if tm is None:
        tm = min(256, _round_up(M, _ROW_TILE))
    tm = max(_ROW_TILE, _round_up(tm, _ROW_TILE))
    Mp = _round_up(M, tm)
    xp = jnp.asarray(x, jnp.float32)
    if Mp != M:
        xp = jnp.zeros((Mp, K), jnp.float32).at[:M].set(xp)
    grid = (Mp // tm,)

    in_specs = [pl.BlockSpec((tm, K), lambda i: (i, 0))]
    operands = [xp]
    flops = 0
    bytes_acc = xp.size * 4 + Mp * Np_out * 4
    max_n = 0
    for wt, b in zip(packed["wts"], packed["bs"]):
        Kl, Nl = wt.shape
        in_specs.append(_resident_spec((Kl, Nl)))
        in_specs.append(_resident_spec((1, Nl)))
        operands += [wt, b]
        flops += 2 * Mp * Kl * Nl
        bytes_acc += wt.size * 2 + b.size * 4
        max_n = max(max_n, Nl)

    # Explicit VMEM budget (key on v7x's 64 MiB): padded operand bytes,
    # conservatively assuming 2 buffers each, + f32 temporaries + slack.
    vmem = 2 * (tm * K * 4 + tm * Np_out * 4)
    vmem += 2 * sum(wt.size * 2 + b.size * 4
                    for wt, b in zip(packed["wts"], packed["bs"]))
    vmem += 4 * tm * max_n * 4            # live f32 intermediates
    vmem += 4 << 20                       # compiler scratch slack
    vmem = int(min(max(vmem, 8 << 20), 100 << 20))

    kernel = functools.partial(_mlp_kernel, num_layers=num_layers)
    out_padded = pl.pallas_call(
        kernel,
        out_shape=jax.ShapeDtypeStruct((Mp, Np_out), jnp.float32),
        grid=grid,
        in_specs=in_specs,
        out_specs=pl.BlockSpec((tm, Np_out), lambda i: (i, 0)),
        compiler_params=pltpu.CompilerParams(
            dimension_semantics=("parallel",),
            vmem_limit_bytes=vmem),
        cost_estimate=pl.CostEstimate(
            flops=flops, transcendentals=0, bytes_accessed=bytes_acc),
    )(*operands)

    return out_padded[:M, :packed["out_dim"]]


def init_params(input_size, hidden_sizes, output_size, key):
    """Random parameters in nn.Linear shapes (to exercise the math — the
    original module zero-inits everything, which makes the forward trivially
    zero; that exact case is checked separately in __main__)."""
    layer_sizes = [input_size] + list(hidden_sizes) + [output_size]
    params = []
    for i in range(len(layer_sizes) - 1):
        key, kw, kb = jax.random.split(key, 3)
        fan_in, fan_out = layer_sizes[i], layer_sizes[i + 1]
        w = jax.random.normal(kw, (fan_out, fan_in), jnp.float32) * 0.1
        b = jax.random.normal(kb, (fan_out,), jnp.float32) * 0.1
        params.append((w, b))
    return params


def mlp_reference(x, params):
    """Pure-JAX f32 reference of the PyTorch forward (PyTorch layout)."""
    n = len(params)
    for i, (w, b) in enumerate(params):
        x = x @ w.T + b
        if i < n - 1:
            x = jnp.maximum(x, 0.0)
    return x


# TODO(synk): get_num_parameters / get_parameters / set_parameters are
# host-side parameter plumbing with no kernel equivalent; not implemented.

if __name__ == "__main__":
    key = jax.random.PRNGKey(0)
    batch, input_size, hidden_sizes, output_size = 32, 16, [32, 32], 8

    kx, kp = jax.random.split(key)
    x = jax.random.normal(kx, (batch, input_size), jnp.float32)

    # 1) Exact module semantics: every layer zero-initialized -> output == 0.
    zero_params = [(jnp.zeros((n, k), jnp.float32), jnp.zeros((n,), jnp.float32))
                   for k, n in zip([input_size] + hidden_sizes,
                                   hidden_sizes + [output_size])]
    out0 = jax.block_until_ready(mlp_forward(x, pack_params(zero_params), tm=16))
    assert out0.shape == (batch, output_size)
    assert bool(jnp.all(out0 == 0.0))

    # 2) Random parameters so the fused matmul/ReLU path is exercised.
    params = init_params(input_size, hidden_sizes, output_size, kp)
    packed = pack_params(params)           # one-time: transpose + pad + bf16
    out = jax.block_until_ready(mlp_forward(x, packed, tm=16))
    ref = mlp_reference(x, params)
    assert out.shape == (batch, output_size)
    # bf16 MXU inputs with f32 accumulation -> ~1e-2 relative accuracy.
    assert jnp.allclose(out, ref, atol=2e-2, rtol=2e-2)
    print("KERNEL_OK")
</pallas_src>

<mosaic_0001>
module attributes {stable_mosaic.version = 11 : i64} {
  func.func @_mlp_kernel(%arg0: i32, %arg1: memref<16x16xf32, #tpu.memory_space<vmem>>, %arg2: memref<16x128xbf16, #tpu.memory_space<vmem>>, %arg3: memref<1x128xf32, #tpu.memory_space<vmem>>, %arg4: memref<128x128xbf16, #tpu.memory_space<vmem>>, %arg5: memref<1x128xf32, #tpu.memory_space<vmem>>, %arg6: memref<128x128xbf16, #tpu.memory_space<vmem>>, %arg7: memref<1x128xf32, #tpu.memory_space<vmem>>, %arg8: memref<16x128xf32, #tpu.memory_space<vmem>>) attributes {dimension_semantics = [#tpu.dimension_semantics<parallel>], iteration_bounds = array<i64: 2>, scalar_prefetch = 0 : i64, scratch_operands = 0 : i64, tpu.core_type = #tpu.core_type<tc>, window_params = [{transform_indices = @transform_0, window_bounds = array<i64: 16, 16>}, {pipeline_mode = #tpu.pipeline_mode<synchronous>, transform_indices = @transform_1, window_bounds = array<i64: 16, 128>}, {pipeline_mode = #tpu.pipeline_mode<synchronous>, transform_indices = @transform_2, window_bounds = array<i64: 1, 128>}, {pipeline_mode = #tpu.pipeline_mode<synchronous>, transform_indices = @transform_3, window_bounds = array<i64: 128, 128>}, {pipeline_mode = #tpu.pipeline_mode<synchronous>, transform_indices = @transform_4, window_bounds = array<i64: 1, 128>}, {pipeline_mode = #tpu.pipeline_mode<synchronous>, transform_indices = @transform_5, window_bounds = array<i64: 128, 128>}, {pipeline_mode = #tpu.pipeline_mode<synchronous>, transform_indices = @transform_6, window_bounds = array<i64: 1, 128>}, {transform_indices = @transform_7, window_bounds = array<i64: 16, 128>}]} {
    %c0 = arith.constant 0 : index
    %c0_0 = arith.constant 0 : index
    %0 = vector.load %arg1[%c0, %c0_0] : memref<16x16xf32, #tpu.memory_space<vmem>>, vector<16x16xf32>
    %c0_1 = arith.constant 0 : index
    %c0_2 = arith.constant 0 : index
    %1 = vector.load %arg2[%c0_1, %c0_2] : memref<16x128xbf16, #tpu.memory_space<vmem>>, vector<16x128xbf16>
    %c0_3 = arith.constant 0 : index
    %c0_4 = arith.constant 0 : index
    %2 = vector.load %arg3[%c0_3, %c0_4] : memref<1x128xf32, #tpu.memory_space<vmem>>, vector<1x128xf32>
    %3 = arith.truncf %0 : vector<16x16xf32> to vector<16x16xbf16>
    %cst = arith.constant dense<0.000000e+00> : vector<16x128xf32>
    %4 = tpu.matmul %3, %1, %cst {dimension_numbers = #tpu.dot_dimension_numbers<[1], [0], [0], [1], [0, 0, 1, 1], [], []>} : vector<16x16xbf16>, vector<16x128xbf16>, vector<16x128xf32> -> vector<16x128xf32>
    %5 = vector.broadcast %2 : vector<1x128xf32> to vector<16x128xf32>
    %6 = arith.addf %4, %5 : vector<16x128xf32>
    %cst_5 = arith.constant 0.000000e+00 : f32
    %7 = vector.broadcast %cst_5 : f32 to vector<16x128xf32>
    %8 = arith.maximumf %6, %7 : vector<16x128xf32>
    %c0_6 = arith.constant 0 : index
    %c0_7 = arith.constant 0 : index
    %9 = vector.load %arg4[%c0_6, %c0_7] : memref<128x128xbf16, #tpu.memory_space<vmem>>, vector<128x128xbf16>
    %c0_8 = arith.constant 0 : index
    %c0_9 = arith.constant 0 : index
    %10 = vector.load %arg5[%c0_8, %c0_9] : memref<1x128xf32, #tpu.memory_space<vmem>>, vector<1x128xf32>
    %11 = arith.truncf %8 : vector<16x128xf32> to vector<16x128xbf16>
    %cst_10 = arith.constant dense<0.000000e+00> : vector<16x128xf32>
    %12 = tpu.matmul %11, %9, %cst_10 {dimension_numbers = #tpu.dot_dimension_numbers<[1], [0], [0], [1], [0, 0, 1, 1], [], []>} : vector<16x128xbf16>, vector<128x128xbf16>, vector<16x128xf32> -> vector<16x128xf32>
    %13 = vector.broadcast %10 : vector<1x128xf32> to vector<16x128xf32>
    %14 = arith.addf %12, %13 : vector<16x128xf32>
    %cst_11 = arith.constant 0.000000e+00 : f32
    %15 = vector.broadcast %cst_11 : f32 to vector<16x128xf32>
    %16 = arith.maximumf %14, %15 : vector<16x128xf32>
    %c0_12 = arith.constant 0 : index
    %c0_13 = arith.constant 0 : index
    %17 = vector.load %arg6[%c0_12, %c0_13] : memref<128x128xbf16, #tpu.memory_space<vmem>>, vector<128x128xbf16>
    %c0_14 = arith.constant 0 : index
    %c0_15 = arith.constant 0 : index
    %18 = vector.load %arg7[%c0_14, %c0_15] : memref<1x128xf32, #tpu.memory_space<vmem>>, vector<1x128xf32>
    %19 = arith.truncf %16 : vector<16x128xf32> to vector<16x128xbf16>
    %cst_16 = arith.constant dense<0.000000e+00> : vector<16x128xf32>
    %20 = tpu.matmul %19, %17, %cst_16 {dimension_numbers = #tpu.dot_dimension_numbers<[1], [0], [0], [1], [0, 0, 1, 1], [], []>} : vector<16x128xbf16>, vector<128x128xbf16>, vector<16x128xf32> -> vector<16x128xf32>
    %21 = vector.broadcast %18 : vector<1x128xf32> to vector<16x128xf32>
    %22 = arith.addf %20, %21 : vector<16x128xf32>
    %c0_17 = arith.constant 0 : index
    %c0_18 = arith.constant 0 : index
    %23 = vector.load %arg8[%c0_17, %c0_18] : memref<16x128xf32, #tpu.memory_space<vmem>>, vector<16x128xf32>
    tpu.vector_store %arg8[%c0_17, %c0_18], %22 {strides = array<i32>} : memref<16x128xf32, #tpu.memory_space<vmem>>, vector<16x128xf32>,
    return
  }
  func.func @transform_0(%arg0: i32) -> (i32, i32) {
    %c0_i32 = arith.constant 0 : i32
    %c0_i32_0 = arith.constant 0 : i32
    return %arg0, %c0_i32 : i32, i32
  }
  func.func @transform_1(%arg0: i32) -> (i32, i32) {
    %c0_i32 = arith.constant 0 : i32
    %c0_i32_0 = arith.constant 0 : i32
    %c0_i32_1 = arith.constant 0 : i32
    return %c0_i32, %c0_i32_0 : i32, i32
  }
  func.func @transform_2(%arg0: i32) -> (i32, i32) {
    %c0_i32 = arith.constant 0 : i32
    %c0_i32_0 = arith.constant 0 : i32
    %c0_i32_1 = arith.constant 0 : i32
    return %c0_i32, %c0_i32_0 : i32, i32
  }
  func.func @transform_3(%arg0: i32) -> (i32, i32) {
    %c0_i32 = arith.constant 0 : i32
    %c0_i32_0 = arith.constant 0 : i32
    %c0_i32_1 = arith.constant 0 : i32
    return %c0_i32, %c0_i32_0 : i32, i32
  }
  func.func @transform_4(%arg0: i32) -> (i32, i32) {
    %c0_i32 = arith.constant 0 : i32
    %c0_i32_0 = arith.constant 0 : i32
    %c0_i32_1 = arith.constant 0 : i32
    return %c0_i32, %c0_i32_0 : i32, i32
  }
  func.func @transform_5(%arg0: i32) -> (i32, i32) {
    %c0_i32 = arith.constant 0 : i32
    %c0_i32_0 = arith.constant 0 : i32
    %c0_i32_1 = arith.constant 0 : i32
    return %c0_i32, %c0_i32_0 : i32, i32
  }
  func.func @transform_6(%arg0: i32) -> (i32, i32) {
    %c0_i32 = arith.constant 0 : i32
    %c0_i32_0 = arith.constant 0 : i32
    %c0_i32_1 = arith.constant 0 : i32
    return %c0_i32, %c0_i32_0 : i32, i32
  }
  func.func @transform_7(%arg0: i32) -> (i32, i32) {
    %c0_i32 = arith.constant 0 : i32
    %c0_i32_0 = arith.constant 0 : i32
    return %arg0, %c0_i32 : i32, i32
  }
}

</mosaic_0001>

<bundles_post_ra>
// kernel: tpu_custom_call.1
= control target key start
LH: loop header
LB: loop body
LE: loop exit
PB: predicated region body
PF: predicated region fallthrough
CT: control target
= control target key end

     0   :  { %12 = vsyncpa [#allocation3], 0  ;;  %s1239_s0 = inlined_call_operand.vmem [shape: f32[32,16], index: 0, kind: input, shape index: {}]   ;;  %s1240_s1 = inlined_call_operand.vmem [shape: bf16[16,128], index: 1, kind: input, shape index: {}]   ;;  %s1241_s2 = inlined_call_operand.vmem [shape: f32[1,128], index: 2, kind: input, shape index: {}]   ;;  %s1242_s3 = inlined_call_operand.hbm [shape: bf16[128,128], index: 3, kind: input, shape index: {}]   ;;  %s1243_s4 = inlined_call_operand.vmem [shape: f32[1,128], index: 4, kind: input, shape index: {}]   ;;  %s1244_s5 = inlined_call_operand.hbm [shape: bf16[128,128], index: 5, kind: input, shape index: {}]   ;;  %s1245_s6 = inlined_call_operand.vmem [shape: f32[1,128], index: 6, kind: input, shape index: {}]   ;;  %s1246_s7 = inlined_call_operand.hbm [shape: f32[32,128], index: 7, kind: output, shape index: {}]  }
   0x1   :  { %13 = vsyncpa [#allocation6], 0 }
   0x2   :  { %14 = vsyncpa [#allocation4], 0 }
   0x3   :  { %16 = vsyncpa [#allocation4 + $0x1], 0  ;;  %s1062_s24 = smov 0   ;;  %s1064_s25 = smov 0  }
   0x4   :  { %s1066_s26 = smov 0   ;;  %s1068_s27 = smov 0  }
   0x5 LB: > { %s1083_s28 = sadd.s32 4294967295, %s1011_s27   ;;  %s704_s29 = sadd.s32 4294967294, %s1011_s27   ;;  %s1011_s27 = sphi %s1068_s27, %s1260_s27   ;;  %s1007_s26 = sphi %s1066_s26, %s1259_s26   ;;  %s1003_s25 = sphi %s1064_s25, %s1258_s25   ;;  %s999_s24 = sphi %s1062_s24, %s1257_s24  }
   0x6   : > { %s1087_s30 = sadd.s32 1, %s1011_s27   ;;  %s181_s8 = sadd.s32 1, %s1007_s26 }
   0x7   : > { %s178_s9 = ssub.s32 %s1011_s27, %s1087_s30  ;;  %p191_p0 = scmp.ne.s32.totalorder %s1007_s26, %s1003_s25 }
   0x8   : > { %p179_p1 = scmp.eq.s32.totalorder %s178_s9, 0  ;;  %p192_p2 = scmp.eq.s32.totalorder %s1083_s28, 1 }
   0x9   : > { %p197_p3 = scmp.ne.s32.totalorder %s1003_s25, %s999_s24  ;;  %p198_p4 = scmp.eq.s32.totalorder %s704_s29, 1 }
   0xa   : > { %s1098_s10 = scalar_select %p179_p1, %s1007_s26, %s181_s8  }
   0xb   : > { %p1100_p5 = por %p192_p2, %p191_p0  ;;  %p1104_p6 = por %p198_p4, %p197_p3 }
   0xc   : > { %p705_p7 = scmp.ge.s32.totalorder %s1011_s27, 1  ;;  %p205_p8 = scmp.lt.s32.totalorder %s1011_s27, 3 }
   0xd   : > { %s1249_s12 = scalar_select %p1104_p6, 1, 0 }
   0xe   : > { %p1247_p9 = scmp.eq.s32.totalorder %s1083_s28, 0  ;;  %p1111_p10 = pnand %p705_p7, %p205_p8 }
   0xf   : > { %s1013_s14 = smov [#allocation2]   ;;  %s1014_s17 = smov [#allocation5]  }
  0x10   : > { %s223_s15 = sshll.u32 %s1013_s14, 4  ;;  %p818_p11 = pneg %p1111_p10  ;;  %s224_s15 = int_to_ptr.vmem [resolvable:$true] %s223_s15 }
  0x11   : > { %s239_s18 = sshll.u32 %s1014_s17, 4  ;;  %s902_s19 = scalar_lea.vmem %s224_s15, 1024  ;;  %s240_s18 = int_to_ptr.vmem [resolvable:$true] %s239_s18 }
  0x12   : > { %p1119_p12 = pnand %p1247_p9, %p818_p11  ;;  %p903_p0 = scmp.ne.s32.totalorder %s224_s15, %s902_s19 }
  0x13   : > { %p910_p3 = scmp.lt.s32.totalorder %s224_s15, %s224_s15  ;;  %p911_p4 = scmp.lt.s32.totalorder %s902_s19, %s902_s19 }
  0x14   : > { %p893_p13 = pneg %p1119_p12 }
  0x15   : > { %p912_p7 = por %p911_p4, %p910_p3 }
  0x16   : > { %p905_p1 = pnand %p903_p0, %p893_p13 }
  0x18   : > { %p906_p2 = pneg %p905_p1 }
  0x1a   : > { %p913_p8 = pnand %p912_p7, %p906_p2 }
  0x1c   : > { %916 = shalt.err (!%p913_p8)
}
  0x1d   : > { %s1015_s20 = smov 64   ;;  %s1016_s21 = smov 4  }
  0x1e   : > { %821 = dma.hbm_to_vmem [thread:$0]  (!%p1119_p12), %s1242_s3, 1024, %s224_s15, [#allocation3], %s1015_s20, %s1015_s20, %s1016_s21  }
  0x1f   : > { %s928_s29 = scalar_lea.vmem %s240_s18, 1024  ;;  %p936_p9 = scmp.lt.s32.totalorder %s240_s18, %s240_s18 }
  0x20   : > { %p929_p11 = scmp.ne.s32.totalorder %s240_s18, %s928_s29  ;;  %p937_p6 = scmp.lt.s32.totalorder %s928_s29, %s928_s29 }
  0x22   : > { %p931_p0 = pnand %p929_p11, %p893_p13  ;;  %p938_p3 = por %p937_p6, %p936_p9 }
  0x24   : > { %p932_p1 = pneg %p931_p0 }
  0x26   : > { %p939_p2 = pnand %p938_p3, %p932_p1 }
  0x28   : > { %942 = shalt.err (!%p939_p2)
}
  0x29   : > { %824 = dma.hbm_to_vmem [thread:$0]  (!%p1119_p12), %s1244_s5, 1024, %s240_s18, [#allocation6], %s1015_s20, %s1015_s20, %s1016_s21  }
  0x2a   : > { %267 = sbr.rel (%p1111_p10) target bundleno = 679 (0x2a7), region = 48  ;;  %p1252_p4 = scmp.eq.s32.totalorder (!%p1111_p10), %s1083_s28, 0 }
  0x2f   : > { %986 = dma.done.wait (%p1252_p4), [#allocation3], 1024   ;;  %p1253_p13 = pmov %p1252_p4 }
  0x30   : > { %p1254_p7 = pmov %p1252_p4 }
  0x31   : > { %988 = vsyncadd (%p1253_p13), [#allocation3], 4294966272 }
  0x32   : > { %990 = dma.done.wait (%p1254_p7), [#allocation6], 1024   ;;  %p1255_p6 = pmov %p1252_p4 }
  0x33   : > { %s713_s14 = sshll.u32 %s1083_s28, 1  ;;  %v1017_v0 = vmov 0.0   ;;  %vm1018_vm0 = vmmov 0   ;;  %v874_v1 = vld [vmem:[%s1240_s1] sm:$0xff]   ;;  %vm329_vm1 = vcmask 130048   ;;  %v875_v5 = vld [vmem:[#allocation2 + $0x38] sm:$0xff]  }
  0x34   : > { %992 = vsyncadd (%p1255_p6), [#allocation6], 4294966272  ;;  %762 = vmatprep.subr.bf16.mxu0 %v1017_v0  ;;  %764 = vmatprep.mubr.msk.bf16.mxu0 %vm1018_vm0, %v1017_v0  ;;  %p304_p9 = scmp.lt.s32.totalorder %s713_s14, 3  ;;  %v876_v6 = vld [vmem:[#allocation2 + $0x30] sm:$0xff]   ;;  %v877_v7 = vld [vmem:[#allocation2 + $0x28] sm:$0xff]   ;;  %s300_s29 = sand.u32 1, %s1003_s25  }
  0x35   : > { %768 = vmatprep.subr.bf16.mxu1 %v1017_v0  ;;  %784 = vmatprep.mubr.msk.bf16.mxu1 %vm1018_vm0, %v1017_v0  ;;  %v878_v8 = vld [vmem:[#allocation2 + $0x20] sm:$0xff]   ;;  %v879_v9 = vld [vmem:[#allocation2 + $0x18] sm:$0xff]   ;;  %v880_v10 = vld [vmem:[#allocation2 + $0x10] sm:$0xff]   ;;  %s712_s8 = sshll.u32 %s300_s29, 4  ;;  %s741_s16 = sshll.u32 %s1083_s28, 8 }
  0x36   : > { %s1262_s14 = smov (!%p304_p9, %s713_s14), 3  ;;  %763 = vmatpush3.bf16.msra.mxu0 %v874_v1  ;;  %769 = vmatpush3.bf16.msra.mxu1 %v875_v5  ;;  %v881_v11 = vld [vmem:[#allocation2 + $0x8] sm:$0xff]   ;;  %v882_v12 = vld [vmem:[#allocation2] sm:$0xff]   ;;  %v883_v13 = vld [vmem:[#allocation5 + $0x38] sm:$0xff]   ;;  %s1197_s19 = scalar_lea.hbm %s1246_s7, %s741_s16 }
  0x37   : > { %s714_s13 = sshll.u32 %s1262_s14, 3  ;;  %788 = vmatprep.subr.bf16.mxu0 %v1017_v0  ;;  %770 = vmatprep.subr.bf16.mxu1 %v1017_v0  ;;  %v884_v14 = vld [vmem:[#allocation5 + $0x30] sm:$0xff]   ;;  %v885_v15 = vld [vmem:[#allocation5 + $0x28] sm:$0xff]   ;;  %v886_v16 = vld [vmem:[#allocation5 + $0x20] sm:$0xff]   ;;  %s1199_s20 = scalar_lea.sflag [#allocation4], %s300_s29 }
  0x38   : > { %s307_s17 = scalar_lea.vmem %s1239_s0, %s714_s13  ;;  %v887_v17 = vld [vmem:[#allocation5 + $0x18] sm:$0xff]   ;;  %v715_v18 = vld [vmem:[%s1241_s2] ss:$0 sm:$0xff]  ;;  %v888_v28 = vld [vmem:[#allocation5 + $0x10] sm:$0xff]   ;;  %s302_s13 = scalar_lea.vmem [#allocation7], %s712_s8 }
  0x39   : > { %v311_v2 = vld [vmem:[%s307_s17] sm:$0xff]  ;;  %v312_v3 = vld [vmem:[%s307_s17 + $0x8] sm:$0xff]  ;;  %s620_s15 = sshll.u32 %s302_s13, 4  ;;  %s1019_s28 = smov [#allocation7]   ;;  %s1192_s15 = int_to_ptr.vmem [resolvable:$true] %s620_s15 }
  0x3a   : > { %v316_v4 = vpack.c.bf16 %v312_v3, %v311_v2  ;;  %771 = vmatpush3.bf16.msra.mxu1 %v876_v6  ;;  %v889_v29 = vld [vmem:[#allocation5 + $0x8] sm:$0xff]   ;;  %v890_v30 = vld [vmem:[#allocation5] sm:$0xff]   ;;  %s943_s21 = scalar_lea.vmem %s1192_s15, 256  ;;  %s947_s22 = sshll.u32 %s1019_s28, 4  ;;  %s948_s22 = int_to_ptr.vmem [resolvable:$false] %s947_s22 }
  0x3b   : > { %772 = vmatprep.subr.bf16.mxu1 %v1017_v0  ;;  %v718_v31 = vld [vmem:[%s1243_s4] ss:$0 sm:$0xff]  ;;  %p944_p10 = scmp.ne.s32.totalorder %s1192_s15, %s943_s21  ;;  %s949_s23 = scalar_lea.vmem %s948_s22, 512 }
  0x3c   : > { %765 = vmatmul.mubr.msk.bf16.vlgmr.msra.gmra.mxu0 %vm329_vm1, %v316_v4  ;;  %v727_v41 = vld [vmem:[%s1245_s6] ss:$0 sm:$0xff]  ;;  %p950_p11 = scmp.lt.s32.totalorder %s1192_s15, %s948_s22  ;;  %p951_p0 = scmp.lt.s32.totalorder %s949_s23, %s943_s21 }
  0x3d   : > { %804 = vmatprep.mubr.msk.bf16.mxu0 %vm1018_vm0, %v1017_v0  ;;  %789 = vmatpush3.bf16.msra.mxu0 %v883_v13  ;;  %p945_p12 = pnand %p944_p10, %p1100_p5 }
  0x3e   : > { %773 = vmatpush3.bf16.msra.mxu1 %v877_v7  ;;  %790 = vmatprep.subr.bf16.mxu0 %v1017_v0  ;;  %p952_p1 = por %p951_p0, %p950_p11 }
  0x3f   : > { %774 = vmatprep.subr.bf16.mxu1 %v1017_v0  ;;  %p946_p8 = pneg %p945_p12 }
  0x41   : > { %791 = vmatpush3.bf16.msra.mxu0 %v884_v14  ;;  %p953_p3 = pnand %p952_p1, %p946_p8 }
  0x42   : > { %775 = vmatpush3.bf16.msra.mxu1 %v878_v8  ;;  %792 = vmatprep.subr.bf16.mxu0 %v1017_v0 }
  0x43   : > { %776 = vmatprep.subr.bf16.mxu1 %v1017_v0 }
  0x45   : > { %793 = vmatpush3.bf16.msra.mxu0 %v885_v15 }
  0x46   : > { %777 = vmatpush3.bf16.msra.mxu1 %v879_v9  ;;  %794 = vmatprep.subr.bf16.mxu0 %v1017_v0 }
  0x47   : > { %778 = vmatprep.subr.bf16.mxu1 %v1017_v0 }
  0x49   : > { %795 = vmatpush3.bf16.msra.mxu0 %v886_v16 }
  0x4a   : > { %779 = vmatpush3.bf16.msra.mxu1 %v880_v10  ;;  %796 = vmatprep.subr.bf16.mxu0 %v1017_v0 }
  0x4b   : > { %780 = vmatprep.subr.bf16.mxu1 %v1017_v0 }
  0x4d   : > { %797 = vmatpush3.bf16.msra.mxu0 %v887_v17 }
  0x4e   : > { %781 = vmatpush3.bf16.msra.mxu1 %v881_v11  ;;  %798 = vmatprep.subr.bf16.mxu0 %v1017_v0 }
  0x4f   : > { %782 = vmatprep.subr.bf16.mxu1 %v1017_v0 }
  0x51   : > { %799 = vmatpush3.bf16.msra.mxu0 %v888_v28 }
  0x52   : > { %783 = vmatpush3.bf16.msra.mxu1 %v882_v12  ;;  %800 = vmatprep.subr.bf16.mxu0 %v1017_v0 }
  0x55   : > { %801 = vmatpush3.bf16.msra.mxu0 %v889_v29 }
  0x56   : > { %802 = vmatprep.subr.bf16.mxu0 %v1017_v0 }
  0x59   : > { %803 = vmatpush3.bf16.msra.mxu0 %v890_v30 }
  0xfc   : > { %v367_v19 = vpop.f32.mrf.mxu0 }
  0xfd   : > { %v368_v21 = vadd.f32 %v715_v18, %v367_v19 }
  0xfe   : > { %v766_v20 = vpop.f32.mrf.mxu0 }
  0xff   : > { %v374_v25 = vmax.f32 %v368_v21, 0.0 }
 0x100   : > { %v370_v22 = vpop.f32.mrf.mxu0 }
 0x101   : > { %v371_v23 = vadd.f32 %v715_v18, %v370_v22 }
 0x102   : > { %v767_v24 = vpop.f32.mrf.mxu0 }
 0x103   : > { %v375_v26 = vmax.f32 %v371_v23, 0.0 }
 0x105   : > { %v393_v27 = vpack.c.bf16 %v375_v26, %v374_v25 }
 0x107   : > { %785 = vmatmul.mubr.bf16.vlgmr.msra.gmra.mxu1 %v393_v27 }
 0x1c7   : > { %v482_v32 = vpop.f32.mrf.mxu1 }
 0x1c8   : > { %v483_v34 = vadd.f32 %v718_v31, %v482_v32 }
 0x1c9   : > { %v786_v33 = vpop.f32.mrf.mxu1 }
 0x1ca   : > { %v489_v38 = vmax.f32 %v483_v34, 0.0 }
 0x1cb   : > { %v485_v35 = vpop.f32.mrf.mxu1 }
 0x1cc   : > { %v486_v36 = vadd.f32 %v718_v31, %v485_v35 }
 0x1cd   : > { %v787_v37 = vpop.f32.mrf.mxu1 }
 0x1ce   : > { %v490_v39 = vmax.f32 %v486_v36, 0.0 }
 0x1d0   : > { %v508_v40 = vpack.c.bf16 %v490_v39, %v489_v38 }
 0x1d2   : > { %805 = vmatmul.mubr.bf16.vlgmr.msra.gmra.mxu0 %v508_v40 }
 0x292   : > { %v597_v42 = vpop.f32.mrf.mxu0 }
 0x293   : > { %v598_v43 = vadd.f32 %v727_v41, %v597_v42 }
 0x294   : > { %v806_v44 = vpop.f32.mrf.mxu0 }
 0x295   : > { %604 = vst [vmem:[%s302_s13] sm:$0xff] %v598_v43 }
 0x296   : > { %v600_v45 = vpop.f32.mrf.mxu0 }
 0x297   : > { %v601_v46 = vadd.f32 %v727_v41, %v600_v45 }
 0x298   : > { %v807_v47 = vpop.f32.mrf.mxu0 }
 0x299   : > { %605 = vst [vmem:[%s302_s13 + $0x8] sm:$0xff] %v601_v46 }
 0x29a   : > { %956 = shalt.err (!%p953_p3)
}
 0x29b   : > { %s957_s29 = scalar_lea.hbm %s1197_s19, 256  ;;  %s961_s14 = scalar_lea.hbm %s1246_s7, 512 }
 0x29c   : > { %p958_p2 = scmp.ne.s32.totalorder %s1197_s19, %s957_s29  ;;  %p962_p7 = scmp.lt.s32.totalorder %s1197_s19, %s1246_s7 }
 0x29d   : > { %p963_p6 = scmp.lt.s32.totalorder %s961_s14, %s957_s29 }
 0x29e   : > { %p959_p4 = pnand %p958_p2, %p1100_p5 }
 0x29f   : > { %p964_p9 = por %p963_p6, %p962_p7 }
 0x2a0   : > { %p960_p13 = pneg %p959_p4 }
 0x2a2   : > { %p965_p10 = pnand %p964_p9, %p960_p13 }
 0x2a4   : > { %968 = shalt.err (!%p965_p10)
}
 0x2a5   : > { %s1020_s17 = smov 128   ;;  %s1021_s18 = smov 8  }
 0x2a6   : > { %816 = dma.vmem_to_hbm [thread:$0]  (%p1100_p5), %s1192_s15, 256, %s1197_s19, %s1199_s20, %s1020_s17, %s1020_s17, %s1021_s18  }
 0x2a7 PF: > { %p833_p12 = scmp.ge.s32.totalorder %s1011_s27, 2  ;;  %s635_s21 = sand.u32 1, %s999_s24  }
 0x2a8   : > { %p1256_p8 = scmp.ne.s32.totalorder %s1249_s12, 0  ;;  %s636_s28 = scalar_lea.sflag [#allocation4], %s635_s21 }
 0x2aa   : > { %p826_p11 = pnand %p833_p12, %p1256_p8 }
 0x2ac   : > { %p827_p0 = pneg %p826_p11 }
 0x2ae   : > { %994 = dma.done.wait (%p827_p0), %s636_s28, 256  }
 0x2af   : > { %996 = vsyncadd (%p827_p0), %s636_s28, 4294967040  ;;  %p19_p1 = scmp.ge.s32.totalorder %s1087_s30, 4   ;;  %s1257_s24 = smov %s1003_s25 }
 0x2b0   : > { %s1258_s25 = smov %s1007_s26  ;;  %s1259_s26 = smov %s1098_s10 }
 0x2b1   : > { %s1260_s27 = smov %s1087_s30  ;;  %21 = sbr.rel (!%p19_p1) target bundleno = 5 (0x5), region = 92 }
 0x2b6   :  { %641 = vsyncpa [#allocation3], 1 }
 0x2b7   :  { %643 = vsyncpa [#allocation3 + $0x1], 1 }
 0x2b8   :  { %644 = vsyncpa [#allocation6], 1 }
 0x2b9   :  { %645 = vsyncpa [#allocation4], 1 }
 0x2ba   :  { %647 = vsyncpa [#allocation4 + $0x1], 1 }

</bundles_post_ra>
